<compile_context>
chip_gen: v6e
topology: v6e:2x2x1
jax: 0.10.0
libtpu: 0.0.40
codegen_flags: <defaults>
</compile_context>

<pallas_src>
import jax
import jax.numpy as jnp
from jax.experimental import pallas as pl
from jax.experimental.pallas import tpu as pltpu

# Tile targets: batch (sublane) axis a multiple of 32 (1-byte output packing),
# seq (lane) axis a large multiple of 128 so output stores stay lane-dense.
_BB_TARGET = 256
_BS_TARGET = 2048


def _mask_kernel(pad_ref, x_ref, o_ref):
    """o = (x != pad), stored directly as bool (1 byte/elem)."""
    pad = pad_ref[0]                      # scalar read from SMEM (scalar slot)
    x = x_ref[...]
    # Compare in the 32-bit dtype of the padding sentinel; for f32 inputs the
    # astype is a no-op, for bf16/int inputs the sentinel (-1) upcasts exactly.
    o_ref[...] = x.astype(pad.dtype) != pad


def _block(n, target):
    # Full-extent block dims are exempt from the (8,128) divisibility rule;
    # otherwise `target` is already an aligned multiple of the tile unit.
    return n if n <= target else target


@jax.jit
def _mask_2d(x2, pad):
    b, s = x2.shape
    bb = _block(b, _BB_TARGET)
    bs = _block(s, _BS_TARGET)
    grid = (pl.cdiv(b, bb), pl.cdiv(s, bs))
    return pl.pallas_call(
        _mask_kernel,
        out_shape=jax.ShapeDtypeStruct((b, s), jnp.bool_),
        grid=grid,
        in_specs=[
            # padding scalar: whole (1,) array resident in SMEM
            pl.BlockSpec(memory_space=pltpu.MemorySpace.SMEM),
            pl.BlockSpec((bb, bs), lambda i, j: (i, j)),
        ],
        out_specs=pl.BlockSpec((bb, bs), lambda i, j: (i, j)),
        compiler_params=pltpu.CompilerParams(
            dimension_semantics=("parallel", "parallel")),
    )(pad, x2)


def mask_forward(x, padding=-1):
    """JAX/Pallas equivalent of Mask.forward.

    Args:
      x: (b, s) or (b, s, 1) array.
      padding: sentinel value marking padded positions.
    Returns:
      bool mask of shape (b, 1, 1, s).
    """
    b = x.shape[0]
    x2 = x.reshape(b, -1)                 # x.view(x.size(0), -1)
    s = x2.shape[1]

    cmp_dtype = jnp.float32 if jnp.issubdtype(x2.dtype, jnp.floating) else jnp.int32
    pad = jnp.full((1,), padding, dtype=cmp_dtype)

    mask2d = _mask_2d(x2, pad)
    # unsqueeze(-2) then unsqueeze(-3): pure metadata reshape, done in JAX.
    return mask2d.reshape(b, 1, 1, s)


if __name__ == "__main__":
    key = jax.random.PRNGKey(0)

    # Primary case matching the module spec: (b, s, 1) input with some -1s.
    b, s = 2, 8
    vals = jax.random.randint(key, (b, s, 1), minval=-1, maxval=5).astype(jnp.float32)
    mask = mask_forward(vals, padding=-1)
    jax.block_until_ready(mask)
    ref = (vals.reshape(b, -1) != -1.0).reshape(b, 1, 1, s)
    assert mask.shape == (b, 1, 1, s), mask.shape
    assert mask.dtype == jnp.bool_, mask.dtype
    assert bool(jnp.all(mask == ref)), "mismatch vs reference (b,s,1) case"

    # (b, s) input case, exercising the tiled multi-step grid (seq > tile).
    b2, s2 = 16, 4096
    k2 = jax.random.PRNGKey(1)
    vals2 = jax.random.randint(k2, (b2, s2), minval=-1, maxval=3).astype(jnp.float32)
    mask2 = mask_forward(vals2, padding=-1)
    jax.block_until_ready(mask2)
    ref2 = (vals2 != -1.0).reshape(b2, 1, 1, s2)
    assert mask2.shape == (b2, 1, 1, s2), mask2.shape
    assert bool(jnp.all(mask2 == ref2)), "mismatch vs reference (b,s) case"

    # Integer-dtype input case (modality index list with -1 padding).
    b3, s3 = 4, 200
    k3 = jax.random.PRNGKey(2)
    vals3 = jax.random.randint(k3, (b3, s3), minval=-1, maxval=4)
    mask3 = mask_forward(vals3, padding=-1)
    jax.block_until_ready(mask3)
    ref3 = (vals3 != -1).reshape(b3, 1, 1, s3)
    assert mask3.shape == (b3, 1, 1, s3), mask3.shape
    assert bool(jnp.all(mask3 == ref3)), "mismatch vs reference int case"

    print("KERNEL_OK")
</pallas_src>

<mosaic_0001>
module attributes {stable_mosaic.version = 11 : i64} {
  func.func @_mask_kernel(%arg0: i32, %arg1: i32, %arg2: memref<1xf32, #tpu.memory_space<smem>>, %arg3: memref<2x8xf32, #tpu.memory_space<vmem>>, %arg4: memref<2x8xi32, #tpu.memory_space<vmem>>) attributes {dimension_semantics = [#tpu.dimension_semantics<parallel>, #tpu.dimension_semantics<parallel>], iteration_bounds = array<i64: 1, 1>, scalar_prefetch = 0 : i64, scratch_operands = 0 : i64, tpu.core_type = #tpu.core_type<tc>, window_params = [{transform_indices = @transform_0, window_bounds = array<i64: 1>}, {transform_indices = @transform_1, window_bounds = array<i64: 2, 8>}, {transform_indices = @transform_2, window_bounds = array<i64: 2, 8>}]} {
    %c0 = arith.constant 0 : index
    %0 = memref.load %arg2[%c0] : memref<1xf32, #tpu.memory_space<smem>>
    %c0_0 = arith.constant 0 : index
    %c0_1 = arith.constant 0 : index
    %1 = vector.load %arg3[%c0_0, %c0_1] : memref<2x8xf32, #tpu.memory_space<vmem>>, vector<2x8xf32>
    %2 = vector.broadcast %0 : f32 to vector<2x8xf32>
    %3 = arith.cmpf one, %1, %2 : vector<2x8xf32>
    %c0_2 = arith.constant 0 : index
    %c0_3 = arith.constant 0 : index
    %4 = vector.load %arg4[%c0_2, %c0_3] : memref<2x8xi32, #tpu.memory_space<vmem>>, vector<2x8xi32>
    %5 = arith.extui %3 : vector<2x8xi1> to vector<2x8xi32>
    %cst = arith.constant dense<0> : vector<2x8xi32>
    %6 = arith.cmpi ne, %4, %cst : vector<2x8xi32>
    tpu.vector_store %arg4[%c0_2, %c0_3], %5 {strides = array<i32>} : memref<2x8xi32, #tpu.memory_space<vmem>>, vector<2x8xi32>,
    return
  }
  func.func @transform_0(%arg0: i32, %arg1: i32) -> i32 {
    %c0_i32 = arith.constant 0 : i32
    %c0_i32_0 = arith.constant 0 : i32
    return %c0_i32 : i32
  }
  func.func @transform_1(%arg0: i32, %arg1: i32) -> (i32, i32) {
    %c0_i32 = arith.constant 0 : i32
    return %arg0, %arg1 : i32, i32
  }
  func.func @transform_2(%arg0: i32, %arg1: i32) -> (i32, i32) {
    %c0_i32 = arith.constant 0 : i32
    return %arg0, %arg1 : i32, i32
  }
}

</mosaic_0001>

<bundles_post_ra>
// kernel: _mask_2d.1
= control target key start
LH: loop header
LB: loop body
LE: loop exit
PB: predicated region body
PF: predicated region fallthrough
CT: control target
= control target key end

     0   :  { %vm17_vm0 = vcmask 58368   ;;  %v24_v2 = vmov 0   ;;  %s49_s0 = inlined_call_operand.<no memory space> [shape: f32[1], index: 0, kind: input, shape index: {}]   ;;  %s50_s1 = inlined_call_operand.vmem [shape: f32[2,8], index: 1, kind: input, shape index: {}]   ;;  %s51_s2 = inlined_call_operand.vmem [shape: s32[2,8], index: 2, kind: output, shape index: {}]  }
   0x1   :  { %v13_v0 = vld [vmem:[%s50_s1] sm:$0x3]  ;;  %v14_v1 = vstv %s49_s0 }
   0x2   :  { %vm15_vm1 = vcmp.ne.f32.partialorder %v13_v0, %v14_v1 }
   0x3   :  { %v16_v3 = vsel %vm15_vm1, 1, %v24_v2 }
   0x4   :  { %18 = vst.msk [vmem:[%s51_s2] sm:$0x3] %vm17_vm0, %v16_v3 }

</bundles_post_ra>
